<compile_context>
chip_gen: v5e
topology: v5e:2x2
jax: 0.10.0
libtpu: 0.0.40
codegen_flags: <defaults>
</compile_context>

<pallas_src>
import functools
import math

import jax
import jax.numpy as jnp
from jax.experimental import pallas as pl
from jax.experimental.pallas import tpu as pltpu

_VMEM_LIMIT_BYTES = 48 * 1024 * 1024  # > default scoped limits, < v7x 64 MiB


def _round_up(v, m):
    return (v + m - 1) // m * m


def _pad_k(dim, *, align=128, cap=512):
    """Padded size and K-tile for a contraction dimension."""
    d_p = _round_up(dim, align)
    if d_p <= cap:
        return d_p, d_p
    return _round_up(dim, cap), cap


def matmul_bias_kernel(a_ref, b_ref, bias_ref, o_ref, acc_ref, *, apply_relu):
    """o = a @ b + bias (optionally relu'd), K-tiled with f32 accumulation.

    a_ref    : (tm, tk)   bf16   streamed row/K tile
    b_ref    : (tk, Hp)   bf16   streamed K tile of the (narrow) rhs
    bias_ref : (1,  Hp)   f32    bias row (zeros when the matmul has no bias)
    o_ref    : (tm, Hp)          lane-dense output row tile
    acc_ref  : (tm, Hp)   f32    VMEM scratch accumulator
    """
    k = pl.program_id(1)

    @pl.when(k == 0)
    def _():
        acc_ref[...] = jnp.zeros_like(acc_ref)

    acc_ref[...] += jnp.dot(a_ref[...], b_ref[...],
                            preferred_element_type=jnp.float32)

    @pl.when(k == pl.num_programs(1) - 1)
    def _():
        h = acc_ref[...] + bias_ref[...]          # f32 VPU bias add
        if apply_relu:
            h = jnp.maximum(h, 0.0)
        o_ref[...] = h.astype(o_ref.dtype)


def _matmul_bias(a, b, bias, *, tm, tk, apply_relu, out_dtype):
    """Row x K tiled pallas_call for one (a @ b + bias) matmul."""
    m, kdim = a.shape
    _, n_out = b.shape
    assert m % tm == 0 and kdim % tk == 0 and n_out % 128 == 0

    flops = 2 * int(m) * int(kdim) * int(n_out)
    bytes_accessed = int(
        m * kdim * a.dtype.itemsize
        + kdim * n_out * b.dtype.itemsize
        + n_out * 4
        + m * n_out * jnp.dtype(out_dtype).itemsize)

    kernel = functools.partial(matmul_bias_kernel, apply_relu=apply_relu)
    return pl.pallas_call(
        kernel,
        out_shape=jax.ShapeDtypeStruct((m, n_out), out_dtype),
        grid_spec=pltpu.PrefetchScalarGridSpec(
            num_scalar_prefetch=0,
            grid=(m // tm, kdim // tk),
            in_specs=[
                pl.BlockSpec((tm, tk), lambda i, k: (i, k)),     # a row/K tile
                pl.BlockSpec((tk, n_out), lambda i, k: (k, 0)),  # rhs K tile
                pl.BlockSpec((1, n_out), lambda i, k: (0, 0)),   # bias row
            ],
            out_specs=pl.BlockSpec((tm, n_out), lambda i, k: (i, 0)),
            scratch_shapes=[pltpu.VMEM((tm, n_out), jnp.float32)],
        ),
        compiler_params=pltpu.CompilerParams(
            dimension_semantics=("parallel", "arbitrary"),
            vmem_limit_bytes=_VMEM_LIMIT_BYTES),
        cost_estimate=pl.CostEstimate(flops=flops, transcendentals=0,
                                      bytes_accessed=bytes_accessed),
    )(a, b, bias)


def pad_gcn_inputs(x, adj, w1, b1, w2, b2, *, tm_cap=256):
    """One-time padding / bf16 casting of all operands (hoisted out of the
    per-forward hot path) plus static tile-size selection."""
    n, f = x.shape
    h1 = w1.shape[1]
    h2 = w2.shape[1]

    # Node-dim padding & tiles (rows of adj/x and the adj K contraction).
    if n <= tm_cap:
        n_p = _round_up(n, 16)        # bf16 sublane packing
        tm = n_p
        tk_n = n_p
    else:
        n_p = _round_up(n, tm_cap)
        tm = tm_cap
        tk_n = tm_cap

    f_p, tk_f = _pad_k(f)             # K of x @ W1
    h1_p, tk_h1 = _pad_k(h1)          # width of layer-1 out and K of h @ W2
    h2_p = _round_up(h2, 128)

    # Zero-padded bf16 MXU operands (f32 accumulation happens in-kernel).
    # NOTE: correctness of the padded rows relies on adj_b's padded columns
    # being exactly zero so padded rows of intermediates never contaminate
    # real output rows; padded rows are sliced off in the wrapper.
    x_b = jnp.zeros((n_p, f_p), jnp.bfloat16).at[:n, :f].set(
        x.astype(jnp.bfloat16))
    adj_b = jnp.zeros((n_p, n_p), jnp.bfloat16).at[:n, :n].set(
        adj.astype(jnp.bfloat16))
    w1_b = jnp.zeros((f_p, h1_p), jnp.bfloat16).at[:f, :h1].set(
        w1.astype(jnp.bfloat16))
    w2_b = jnp.zeros((h1_p, h2_p), jnp.bfloat16).at[:h1, :h2].set(
        w2.astype(jnp.bfloat16))
    b1_p = jnp.zeros((1, h1_p), jnp.float32).at[0, :h1].set(
        b1.astype(jnp.float32))
    b2_p = jnp.zeros((1, h2_p), jnp.float32).at[0, :h2].set(
        b2.astype(jnp.float32))

    padded = (adj_b, x_b, w1_b, b1_p, w2_b, b2_p)
    tiles = dict(tm=tm, tk_n=tk_n, tk_f=tk_f, tk_h1=tk_h1)
    return padded, tiles, (n, h2)


def gcn_forward_padded(adj_b, x_b, w1_b, b1_p, w2_b, b2_p,
                       *, tm, tk_n, tk_f, tk_h1):
    """2-layer GCN forward (eval mode) on pre-padded operands."""
    h1_p = w1_b.shape[1]
    h2_p = w2_b.shape[1]
    zero1 = jnp.zeros((1, h1_p), jnp.float32)
    zero2 = jnp.zeros((1, h2_p), jnp.float32)

    # ---- Layer 1: relu(adj @ (x @ W1) + b1) ----
    xw1 = _matmul_bias(x_b, w1_b, zero1, tm=tm, tk=tk_f,
                       apply_relu=False, out_dtype=jnp.bfloat16)
    h = _matmul_bias(adj_b, xw1, b1_p, tm=tm, tk=tk_n,
                     apply_relu=True, out_dtype=jnp.bfloat16)

    # TODO(synk): F.dropout is an identity in eval mode; training-mode dropout
    # would need pltpu.prng_seed / pltpu.stateful_bernoulli — omitted here.

    # ---- Layer 2: adj @ (h @ W2) + b2 ----
    xw2 = _matmul_bias(h, w2_b, zero2, tm=tm, tk=tk_h1,
                       apply_relu=False, out_dtype=jnp.bfloat16)
    out = _matmul_bias(adj_b, xw2, b2_p, tm=tm, tk=tk_n,
                       apply_relu=False, out_dtype=jnp.float32)
    return out


def gcn_forward(x, adj, w1, b1, w2, b2):
    """Convenience wrapper: pad once, run the padded forward, slice back."""
    padded, tiles, (n, h2) = pad_gcn_inputs(x, adj, w1, b1, w2, b2)
    fwd = jax.jit(functools.partial(gcn_forward_padded, **tiles))
    out_p = fwd(*padded)
    return out_p[:n, :h2]


def init_gc_params(key, in_features, out_features):
    """Matches GraphConvolution.reset_parameters: U(-stdv, stdv), stdv=1/sqrt(out)."""
    stdv = 1.0 / math.sqrt(out_features)
    kw, kb = jax.random.split(key)
    w = jax.random.uniform(kw, (in_features, out_features), jnp.float32,
                           minval=-stdv, maxval=stdv)
    b = jax.random.uniform(kb, (out_features,), jnp.float32,
                           minval=-stdv, maxval=stdv)
    return w, b


if __name__ == "__main__":
    # Small, module-consistent shapes.
    N = 8          # number of graph nodes
    FEATS = 16     # input feature dim
    NHID = 32      # gc1 output dim
    NHID2 = 8      # gc2 output dim

    key = jax.random.PRNGKey(0)
    kx, kadj, k1, k2 = jax.random.split(key, 4)

    x = jax.random.normal(kx, (N, FEATS), jnp.float32)

    # Symmetric row-normalized dense adjacency (th.spmm == dense matmul here).
    a = jax.random.uniform(kadj, (N, N), jnp.float32)
    a = (a + a.T) * 0.5 + jnp.eye(N, dtype=jnp.float32)
    adj = a / jnp.sum(a, axis=1, keepdims=True)

    w1, b1 = init_gc_params(k1, FEATS, NHID)
    w2, b2 = init_gc_params(k2, NHID, NHID2)

    out = gcn_forward(x, adj, w1, b1, w2, b2)
    out = jax.block_until_ready(out)

    # Pure-JAX f32 reference of the same forward semantics (kernel uses bf16
    # MXU operands with f32 accumulation -> loose tolerance).
    h_ref = jnp.maximum(adj @ (x @ w1) + b1, 0.0)
    ref = adj @ (h_ref @ w2) + b2
    assert out.shape == (N, NHID2)
    assert jnp.allclose(out, ref, atol=5e-2, rtol=5e-2), (
        float(jnp.max(jnp.abs(out - ref))))

    print("KERNEL_OK")
</pallas_src>

<mosaic_0001>
module attributes {stable_mosaic.version = 11 : i64} {
  func.func @matmul_bias_kernel(%arg0: i32, %arg1: i32, %arg2: memref<16x128xbf16, #tpu.memory_space<vmem>>, %arg3: memref<128x128xbf16, #tpu.memory_space<vmem>>, %arg4: memref<1x128xf32, #tpu.memory_space<vmem>>, %arg5: memref<16x128xbf16, #tpu.memory_space<vmem>>, %arg6: memref<16x128xf32, #tpu.memory_space<vmem>>) attributes {dimension_semantics = [#tpu.dimension_semantics<parallel>, #tpu.dimension_semantics<arbitrary>], iteration_bounds = array<i64: 1, 1>, scalar_prefetch = 0 : i64, scratch_operands = 1 : i64, tpu.core_type = #tpu.core_type<tc>, window_params = [{transform_indices = @transform_0, window_bounds = array<i64: 16, 128>}, {transform_indices = @transform_1, window_bounds = array<i64: 128, 128>}, {pipeline_mode = #tpu.pipeline_mode<synchronous>, transform_indices = @transform_2, window_bounds = array<i64: 1, 128>}, {transform_indices = @transform_3, window_bounds = array<i64: 16, 128>}]} {
    %c0_i32 = arith.constant 0 : i32
    %0 = arith.cmpi eq, %arg1, %c0_i32 : i32
    %1 = arith.extui %0 : i1 to i32
    %c0_i32_0 = arith.constant 0 : i32
    %2 = arith.cmpi ne, %1, %c0_i32_0 : i32
    scf.if %2 {
      %cst_10 = arith.constant 0.000000e+00 : f32
      %12 = vector.broadcast %cst_10 : f32 to vector<16x128xf32>
      %c0_11 = arith.constant 0 : index
      %c0_12 = arith.constant 0 : index
      %13 = vector.load %arg6[%c0_11, %c0_12] : memref<16x128xf32, #tpu.memory_space<vmem>>, vector<16x128xf32>
      tpu.vector_store %arg6[%c0_11, %c0_12], %12 {strides = array<i32>} : memref<16x128xf32, #tpu.memory_space<vmem>>, vector<16x128xf32>,
    } else {
    }
    %c0 = arith.constant 0 : index
    %c0_1 = arith.constant 0 : index
    %3 = vector.load %arg6[%c0, %c0_1] : memref<16x128xf32, #tpu.memory_space<vmem>>, vector<16x128xf32>
    %c0_2 = arith.constant 0 : index
    %c0_3 = arith.constant 0 : index
    %4 = vector.load %arg2[%c0_2, %c0_3] : memref<16x128xbf16, #tpu.memory_space<vmem>>, vector<16x128xbf16>
    %c0_4 = arith.constant 0 : index
    %c0_5 = arith.constant 0 : index
    %5 = vector.load %arg3[%c0_4, %c0_5] : memref<128x128xbf16, #tpu.memory_space<vmem>>, vector<128x128xbf16>
    %cst = arith.constant dense<0.000000e+00> : vector<16x128xf32>
    %6 = tpu.matmul %4, %5, %cst {dimension_numbers = #tpu.dot_dimension_numbers<[1], [0], [0], [1], [0, 0, 1, 1], [], []>} : vector<16x128xbf16>, vector<128x128xbf16>, vector<16x128xf32> -> vector<16x128xf32>
    %7 = arith.addf %3, %6 : vector<16x128xf32>
    %c0_6 = arith.constant 0 : index
    %c0_7 = arith.constant 0 : index
    %8 = vector.load %arg6[%c0_6, %c0_7] : memref<16x128xf32, #tpu.memory_space<vmem>>, vector<16x128xf32>
    tpu.vector_store %arg6[%c0_6, %c0_7], %7 {strides = array<i32>} : memref<16x128xf32, #tpu.memory_space<vmem>>, vector<16x128xf32>,
    %c0_i32_8 = arith.constant 0 : i32
    %9 = arith.cmpi eq, %arg1, %c0_i32_8 : i32
    %10 = arith.extui %9 : i1 to i32
    %c0_i32_9 = arith.constant 0 : i32
    %11 = arith.cmpi ne, %10, %c0_i32_9 : i32
    scf.if %11 {
      %c0_10 = arith.constant 0 : index
      %c0_11 = arith.constant 0 : index
      %12 = vector.load %arg6[%c0_10, %c0_11] : memref<16x128xf32, #tpu.memory_space<vmem>>, vector<16x128xf32>
      %c0_12 = arith.constant 0 : index
      %c0_13 = arith.constant 0 : index
      %13 = vector.load %arg4[%c0_12, %c0_13] : memref<1x128xf32, #tpu.memory_space<vmem>>, vector<1x128xf32>
      %14 = vector.broadcast %13 : vector<1x128xf32> to vector<16x128xf32>
      %15 = arith.addf %12, %14 : vector<16x128xf32>
      %16 = arith.truncf %15 : vector<16x128xf32> to vector<16x128xbf16>
      %c0_14 = arith.constant 0 : index
      %c0_15 = arith.constant 0 : index
      %17 = vector.load %arg5[%c0_14, %c0_15] : memref<16x128xbf16, #tpu.memory_space<vmem>>, vector<16x128xbf16>
      tpu.vector_store %arg5[%c0_14, %c0_15], %16 {strides = array<i32>} : memref<16x128xbf16, #tpu.memory_space<vmem>>, vector<16x128xbf16>,
    } else {
    }
    return
  }
  func.func @transform_0(%arg0: i32, %arg1: i32) -> (i32, i32) {
    %c0_i32 = arith.constant 0 : i32
    return %arg0, %arg1 : i32, i32
  }
  func.func @transform_1(%arg0: i32, %arg1: i32) -> (i32, i32) {
    %c0_i32 = arith.constant 0 : i32
    %c0_i32_0 = arith.constant 0 : i32
    return %arg1, %c0_i32 : i32, i32
  }
  func.func @transform_2(%arg0: i32, %arg1: i32) -> (i32, i32) {
    %c0_i32 = arith.constant 0 : i32
    %c0_i32_0 = arith.constant 0 : i32
    %c0_i32_1 = arith.constant 0 : i32
    return %c0_i32, %c0_i32_0 : i32, i32
  }
  func.func @transform_3(%arg0: i32, %arg1: i32) -> (i32, i32) {
    %c0_i32 = arith.constant 0 : i32
    %c0_i32_0 = arith.constant 0 : i32
    return %arg0, %c0_i32 : i32, i32
  }
}

module attributes {stable_mosaic.version = 11 : i64} {
  func.func @matmul_bias_kernel(%arg0: i32, %arg1: i32, %arg2: memref<16x16xbf16, #tpu.memory_space<vmem>>, %arg3: memref<16x128xbf16, #tpu.memory_space<vmem>>, %arg4: memref<1x128xf32, #tpu.memory_space<vmem>>, %arg5: memref<16x128xbf16, #tpu.memory_space<vmem>>, %arg6: memref<16x128xf32, #tpu.memory_space<vmem>>) attributes {dimension_semantics = [#tpu.dimension_semantics<parallel>, #tpu.dimension_semantics<arbitrary>], iteration_bounds = array<i64: 1, 1>, scalar_prefetch = 0 : i64, scratch_operands = 1 : i64, tpu.core_type = #tpu.core_type<tc>, window_params = [{transform_indices = @transform_0, window_bounds = array<i64: 16, 16>}, {transform_indices = @transform_1, window_bounds = array<i64: 16, 128>}, {pipeline_mode = #tpu.pipeline_mode<synchronous>, transform_indices = @transform_2, window_bounds = array<i64: 1, 128>}, {transform_indices = @transform_3, window_bounds = array<i64: 16, 128>}]} {
    %c0_i32 = arith.constant 0 : i32
    %0 = arith.cmpi eq, %arg1, %c0_i32 : i32
    %1 = arith.extui %0 : i1 to i32
    %c0_i32_0 = arith.constant 0 : i32
    %2 = arith.cmpi ne, %1, %c0_i32_0 : i32
    scf.if %2 {
      %cst_10 = arith.constant 0.000000e+00 : f32
      %12 = vector.broadcast %cst_10 : f32 to vector<16x128xf32>
      %c0_11 = arith.constant 0 : index
      %c0_12 = arith.constant 0 : index
      %13 = vector.load %arg6[%c0_11, %c0_12] : memref<16x128xf32, #tpu.memory_space<vmem>>, vector<16x128xf32>
      tpu.vector_store %arg6[%c0_11, %c0_12], %12 {strides = array<i32>} : memref<16x128xf32, #tpu.memory_space<vmem>>, vector<16x128xf32>,
    } else {
    }
    %c0 = arith.constant 0 : index
    %c0_1 = arith.constant 0 : index
    %3 = vector.load %arg6[%c0, %c0_1] : memref<16x128xf32, #tpu.memory_space<vmem>>, vector<16x128xf32>
    %c0_2 = arith.constant 0 : index
    %c0_3 = arith.constant 0 : index
    %4 = vector.load %arg2[%c0_2, %c0_3] : memref<16x16xbf16, #tpu.memory_space<vmem>>, vector<16x16xbf16>
    %c0_4 = arith.constant 0 : index
    %c0_5 = arith.constant 0 : index
    %5 = vector.load %arg3[%c0_4, %c0_5] : memref<16x128xbf16, #tpu.memory_space<vmem>>, vector<16x128xbf16>
    %cst = arith.constant dense<0.000000e+00> : vector<16x128xf32>
    %6 = tpu.matmul %4, %5, %cst {dimension_numbers = #tpu.dot_dimension_numbers<[1], [0], [0], [1], [0, 0, 1, 1], [], []>} : vector<16x16xbf16>, vector<16x128xbf16>, vector<16x128xf32> -> vector<16x128xf32>
    %7 = arith.addf %3, %6 : vector<16x128xf32>
    %c0_6 = arith.constant 0 : index
    %c0_7 = arith.constant 0 : index
    %8 = vector.load %arg6[%c0_6, %c0_7] : memref<16x128xf32, #tpu.memory_space<vmem>>, vector<16x128xf32>
    tpu.vector_store %arg6[%c0_6, %c0_7], %7 {strides = array<i32>} : memref<16x128xf32, #tpu.memory_space<vmem>>, vector<16x128xf32>,
    %c0_i32_8 = arith.constant 0 : i32
    %9 = arith.cmpi eq, %arg1, %c0_i32_8 : i32
    %10 = arith.extui %9 : i1 to i32
    %c0_i32_9 = arith.constant 0 : i32
    %11 = arith.cmpi ne, %10, %c0_i32_9 : i32
    scf.if %11 {
      %c0_10 = arith.constant 0 : index
      %c0_11 = arith.constant 0 : index
      %12 = vector.load %arg6[%c0_10, %c0_11] : memref<16x128xf32, #tpu.memory_space<vmem>>, vector<16x128xf32>
      %c0_12 = arith.constant 0 : index
      %c0_13 = arith.constant 0 : index
      %13 = vector.load %arg4[%c0_12, %c0_13] : memref<1x128xf32, #tpu.memory_space<vmem>>, vector<1x128xf32>
      %14 = vector.broadcast %13 : vector<1x128xf32> to vector<16x128xf32>
      %15 = arith.addf %12, %14 : vector<16x128xf32>
      %cst_14 = arith.constant 0.000000e+00 : f32
      %16 = vector.broadcast %cst_14 : f32 to vector<16x128xf32>
      %17 = arith.maximumf %15, %16 : vector<16x128xf32>
      %18 = arith.truncf %17 : vector<16x128xf32> to vector<16x128xbf16>
      %c0_15 = arith.constant 0 : index
      %c0_16 = arith.constant 0 : index
      %19 = vector.load %arg5[%c0_15, %c0_16] : memref<16x128xbf16, #tpu.memory_space<vmem>>, vector<16x128xbf16>
      tpu.vector_store %arg5[%c0_15, %c0_16], %18 {strides = array<i32>} : memref<16x128xbf16, #tpu.memory_space<vmem>>, vector<16x128xbf16>,
    } else {
    }
    return
  }
  func.func @transform_0(%arg0: i32, %arg1: i32) -> (i32, i32) {
    %c0_i32 = arith.constant 0 : i32
    return %arg0, %arg1 : i32, i32
  }
  func.func @transform_1(%arg0: i32, %arg1: i32) -> (i32, i32) {
    %c0_i32 = arith.constant 0 : i32
    %c0_i32_0 = arith.constant 0 : i32
    return %arg1, %c0_i32 : i32, i32
  }
  func.func @transform_2(%arg0: i32, %arg1: i32) -> (i32, i32) {
    %c0_i32 = arith.constant 0 : i32
    %c0_i32_0 = arith.constant 0 : i32
    %c0_i32_1 = arith.constant 0 : i32
    return %c0_i32, %c0_i32_0 : i32, i32
  }
  func.func @transform_3(%arg0: i32, %arg1: i32) -> (i32, i32) {
    %c0_i32 = arith.constant 0 : i32
    %c0_i32_0 = arith.constant 0 : i32
    return %arg0, %c0_i32 : i32, i32
  }
}

module attributes {stable_mosaic.version = 11 : i64} {
  func.func @matmul_bias_kernel(%arg0: i32, %arg1: i32, %arg2: memref<16x128xbf16, #tpu.memory_space<vmem>>, %arg3: memref<128x128xbf16, #tpu.memory_space<vmem>>, %arg4: memref<1x128xf32, #tpu.memory_space<vmem>>, %arg5: memref<16x128xbf16, #tpu.memory_space<vmem>>, %arg6: memref<16x128xf32, #tpu.memory_space<vmem>>) attributes {dimension_semantics = [#tpu.dimension_semantics<parallel>, #tpu.dimension_semantics<arbitrary>], iteration_bounds = array<i64: 1, 1>, scalar_prefetch = 0 : i64, scratch_operands = 1 : i64, tpu.core_type = #tpu.core_type<tc>, window_params = [{transform_indices = @transform_0, window_bounds = array<i64: 16, 128>}, {transform_indices = @transform_1, window_bounds = array<i64: 128, 128>}, {pipeline_mode = #tpu.pipeline_mode<synchronous>, transform_indices = @transform_2, window_bounds = array<i64: 1, 128>}, {transform_indices = @transform_3, window_bounds = array<i64: 16, 128>}]} {
    %c0_i32 = arith.constant 0 : i32
    %0 = arith.cmpi eq, %arg1, %c0_i32 : i32
    %1 = arith.extui %0 : i1 to i32
    %c0_i32_0 = arith.constant 0 : i32
    %2 = arith.cmpi ne, %1, %c0_i32_0 : i32
    scf.if %2 {
      %cst_10 = arith.constant 0.000000e+00 : f32
      %12 = vector.broadcast %cst_10 : f32 to vector<16x128xf32>
      %c0_11 = arith.constant 0 : index
      %c0_12 = arith.constant 0 : index
      %13 = vector.load %arg6[%c0_11, %c0_12] : memref<16x128xf32, #tpu.memory_space<vmem>>, vector<16x128xf32>
      tpu.vector_store %arg6[%c0_11, %c0_12], %12 {strides = array<i32>} : memref<16x128xf32, #tpu.memory_space<vmem>>, vector<16x128xf32>,
    } else {
    }
    %c0 = arith.constant 0 : index
    %c0_1 = arith.constant 0 : index
    %3 = vector.load %arg6[%c0, %c0_1] : memref<16x128xf32, #tpu.memory_space<vmem>>, vector<16x128xf32>
    %c0_2 = arith.constant 0 : index
    %c0_3 = arith.constant 0 : index
    %4 = vector.load %arg2[%c0_2, %c0_3] : memref<16x128xbf16, #tpu.memory_space<vmem>>, vector<16x128xbf16>
    %c0_4 = arith.constant 0 : index
    %c0_5 = arith.constant 0 : index
    %5 = vector.load %arg3[%c0_4, %c0_5] : memref<128x128xbf16, #tpu.memory_space<vmem>>, vector<128x128xbf16>
    %cst = arith.constant dense<0.000000e+00> : vector<16x128xf32>
    %6 = tpu.matmul %4, %5, %cst {dimension_numbers = #tpu.dot_dimension_numbers<[1], [0], [0], [1], [0, 0, 1, 1], [], []>} : vector<16x128xbf16>, vector<128x128xbf16>, vector<16x128xf32> -> vector<16x128xf32>
    %7 = arith.addf %3, %6 : vector<16x128xf32>
    %c0_6 = arith.constant 0 : index
    %c0_7 = arith.constant 0 : index
    %8 = vector.load %arg6[%c0_6, %c0_7] : memref<16x128xf32, #tpu.memory_space<vmem>>, vector<16x128xf32>
    tpu.vector_store %arg6[%c0_6, %c0_7], %7 {strides = array<i32>} : memref<16x128xf32, #tpu.memory_space<vmem>>, vector<16x128xf32>,
    %c0_i32_8 = arith.constant 0 : i32
    %9 = arith.cmpi eq, %arg1, %c0_i32_8 : i32
    %10 = arith.extui %9 : i1 to i32
    %c0_i32_9 = arith.constant 0 : i32
    %11 = arith.cmpi ne, %10, %c0_i32_9 : i32
    scf.if %11 {
      %c0_10 = arith.constant 0 : index
      %c0_11 = arith.constant 0 : index
      %12 = vector.load %arg6[%c0_10, %c0_11] : memref<16x128xf32, #tpu.memory_space<vmem>>, vector<16x128xf32>
      %c0_12 = arith.constant 0 : index
      %c0_13 = arith.constant 0 : index
      %13 = vector.load %arg4[%c0_12, %c0_13] : memref<1x128xf32, #tpu.memory_space<vmem>>, vector<1x128xf32>
      %14 = vector.broadcast %13 : vector<1x128xf32> to vector<16x128xf32>
      %15 = arith.addf %12, %14 : vector<16x128xf32>
      %16 = arith.truncf %15 : vector<16x128xf32> to vector<16x128xbf16>
      %c0_14 = arith.constant 0 : index
      %c0_15 = arith.constant 0 : index
      %17 = vector.load %arg5[%c0_14, %c0_15] : memref<16x128xbf16, #tpu.memory_space<vmem>>, vector<16x128xbf16>
      tpu.vector_store %arg5[%c0_14, %c0_15], %16 {strides = array<i32>} : memref<16x128xbf16, #tpu.memory_space<vmem>>, vector<16x128xbf16>,
    } else {
    }
    return
  }
  func.func @transform_0(%arg0: i32, %arg1: i32) -> (i32, i32) {
    %c0_i32 = arith.constant 0 : i32
    return %arg0, %arg1 : i32, i32
  }
  func.func @transform_1(%arg0: i32, %arg1: i32) -> (i32, i32) {
    %c0_i32 = arith.constant 0 : i32
    %c0_i32_0 = arith.constant 0 : i32
    return %arg1, %c0_i32 : i32, i32
  }
  func.func @transform_2(%arg0: i32, %arg1: i32) -> (i32, i32) {
    %c0_i32 = arith.constant 0 : i32
    %c0_i32_0 = arith.constant 0 : i32
    %c0_i32_1 = arith.constant 0 : i32
    return %c0_i32, %c0_i32_0 : i32, i32
  }
  func.func @transform_3(%arg0: i32, %arg1: i32) -> (i32, i32) {
    %c0_i32 = arith.constant 0 : i32
    %c0_i32_0 = arith.constant 0 : i32
    return %arg0, %c0_i32 : i32, i32
  }
}

module attributes {stable_mosaic.version = 11 : i64} {
  func.func @matmul_bias_kernel(%arg0: i32, %arg1: i32, %arg2: memref<16x16xbf16, #tpu.memory_space<vmem>>, %arg3: memref<16x128xbf16, #tpu.memory_space<vmem>>, %arg4: memref<1x128xf32, #tpu.memory_space<vmem>>, %arg5: memref<16x128xf32, #tpu.memory_space<vmem>>, %arg6: memref<16x128xf32, #tpu.memory_space<vmem>>) attributes {dimension_semantics = [#tpu.dimension_semantics<parallel>, #tpu.dimension_semantics<arbitrary>], iteration_bounds = array<i64: 1, 1>, scalar_prefetch = 0 : i64, scratch_operands = 1 : i64, tpu.core_type = #tpu.core_type<tc>, window_params = [{transform_indices = @transform_0, window_bounds = array<i64: 16, 16>}, {transform_indices = @transform_1, window_bounds = array<i64: 16, 128>}, {pipeline_mode = #tpu.pipeline_mode<synchronous>, transform_indices = @transform_2, window_bounds = array<i64: 1, 128>}, {transform_indices = @transform_3, window_bounds = array<i64: 16, 128>}]} {
    %c0_i32 = arith.constant 0 : i32
    %0 = arith.cmpi eq, %arg1, %c0_i32 : i32
    %1 = arith.extui %0 : i1 to i32
    %c0_i32_0 = arith.constant 0 : i32
    %2 = arith.cmpi ne, %1, %c0_i32_0 : i32
    scf.if %2 {
      %cst_10 = arith.constant 0.000000e+00 : f32
      %12 = vector.broadcast %cst_10 : f32 to vector<16x128xf32>
      %c0_11 = arith.constant 0 : index
      %c0_12 = arith.constant 0 : index
      %13 = vector.load %arg6[%c0_11, %c0_12] : memref<16x128xf32, #tpu.memory_space<vmem>>, vector<16x128xf32>
      tpu.vector_store %arg6[%c0_11, %c0_12], %12 {strides = array<i32>} : memref<16x128xf32, #tpu.memory_space<vmem>>, vector<16x128xf32>,
    } else {
    }
    %c0 = arith.constant 0 : index
    %c0_1 = arith.constant 0 : index
    %3 = vector.load %arg6[%c0, %c0_1] : memref<16x128xf32, #tpu.memory_space<vmem>>, vector<16x128xf32>
    %c0_2 = arith.constant 0 : index
    %c0_3 = arith.constant 0 : index
    %4 = vector.load %arg2[%c0_2, %c0_3] : memref<16x16xbf16, #tpu.memory_space<vmem>>, vector<16x16xbf16>
    %c0_4 = arith.constant 0 : index
    %c0_5 = arith.constant 0 : index
    %5 = vector.load %arg3[%c0_4, %c0_5] : memref<16x128xbf16, #tpu.memory_space<vmem>>, vector<16x128xbf16>
    %cst = arith.constant dense<0.000000e+00> : vector<16x128xf32>
    %6 = tpu.matmul %4, %5, %cst {dimension_numbers = #tpu.dot_dimension_numbers<[1], [0], [0], [1], [0, 0, 1, 1], [], []>} : vector<16x16xbf16>, vector<16x128xbf16>, vector<16x128xf32> -> vector<16x128xf32>
    %7 = arith.addf %3, %6 : vector<16x128xf32>
    %c0_6 = arith.constant 0 : index
    %c0_7 = arith.constant 0 : index
    %8 = vector.load %arg6[%c0_6, %c0_7] : memref<16x128xf32, #tpu.memory_space<vmem>>, vector<16x128xf32>
    tpu.vector_store %arg6[%c0_6, %c0_7], %7 {strides = array<i32>} : memref<16x128xf32, #tpu.memory_space<vmem>>, vector<16x128xf32>,
    %c0_i32_8 = arith.constant 0 : i32
    %9 = arith.cmpi eq, %arg1, %c0_i32_8 : i32
    %10 = arith.extui %9 : i1 to i32
    %c0_i32_9 = arith.constant 0 : i32
    %11 = arith.cmpi ne, %10, %c0_i32_9 : i32
    scf.if %11 {
      %c0_10 = arith.constant 0 : index
      %c0_11 = arith.constant 0 : index
      %12 = vector.load %arg6[%c0_10, %c0_11] : memref<16x128xf32, #tpu.memory_space<vmem>>, vector<16x128xf32>
      %c0_12 = arith.constant 0 : index
      %c0_13 = arith.constant 0 : index
      %13 = vector.load %arg4[%c0_12, %c0_13] : memref<1x128xf32, #tpu.memory_space<vmem>>, vector<1x128xf32>
      %14 = vector.broadcast %13 : vector<1x128xf32> to vector<16x128xf32>
      %15 = arith.addf %12, %14 : vector<16x128xf32>
      %c0_14 = arith.constant 0 : index
      %c0_15 = arith.constant 0 : index
      %16 = vector.load %arg5[%c0_14, %c0_15] : memref<16x128xf32, #tpu.memory_space<vmem>>, vector<16x128xf32>
      tpu.vector_store %arg5[%c0_14, %c0_15], %15 {strides = array<i32>} : memref<16x128xf32, #tpu.memory_space<vmem>>, vector<16x128xf32>,
    } else {
    }
    return
  }
  func.func @transform_0(%arg0: i32, %arg1: i32) -> (i32, i32) {
    %c0_i32 = arith.constant 0 : i32
    return %arg0, %arg1 : i32, i32
  }
  func.func @transform_1(%arg0: i32, %arg1: i32) -> (i32, i32) {
    %c0_i32 = arith.constant 0 : i32
    %c0_i32_0 = arith.constant 0 : i32
    return %arg1, %c0_i32 : i32, i32
  }
  func.func @transform_2(%arg0: i32, %arg1: i32) -> (i32, i32) {
    %c0_i32 = arith.constant 0 : i32
    %c0_i32_0 = arith.constant 0 : i32
    %c0_i32_1 = arith.constant 0 : i32
    return %c0_i32, %c0_i32_0 : i32, i32
  }
  func.func @transform_3(%arg0: i32, %arg1: i32) -> (i32, i32) {
    %c0_i32 = arith.constant 0 : i32
    %c0_i32_0 = arith.constant 0 : i32
    return %arg0, %c0_i32 : i32, i32
  }
}

</mosaic_0001>

<bundles_post_ra>
// kernel: gcn_forward_padded.6
= control target key start
LH: loop header
LB: loop body
LE: loop exit
PB: predicated region body
PF: predicated region fallthrough
CT: control target
= control target key end

     0   :  { %s235_s1 = inlined_call_operand.vmem [shape: bf16[128,128], index: 1, kind: input, shape index: {}]   ;;  %s236_s2 = inlined_call_operand.vmem [shape: f32[1,128], index: 2, kind: input, shape index: {}]   ;;  %s237_s0 = inlined_call_operand.vmem [shape: bf16[16,128], index: 0, kind: input, shape index: {}]   ;;  %s238_s3 = inlined_call_operand.vmem [shape: bf16[16,128], index: 3, kind: output, shape index: {}]  }
   0x1   :  { %v175_v0 = vld [vmem:[%s235_s1 + $0x38] sm:$0xff]  ;;  %v174_v1 = vld [vmem:[%s235_s1 + $0x30] sm:$0xff]  ;;  %v173_v2 = vld [vmem:[%s235_s1 + $0x28] sm:$0xff] }
   0x2   :  { %94 = vmatpush.bf16.msra.mxu0 %v175_v0  ;;  %v172_v3 = vld [vmem:[%s235_s1 + $0x20] sm:$0xff]  ;;  %v171_v4 = vld [vmem:[%s235_s1 + $0x18] sm:$0xff]  ;;  %v170_v5 = vld [vmem:[%s235_s1 + $0x10] sm:$0xff] }
   0x3   :  { %v169_v6 = vld [vmem:[%s235_s1 + $0x8] sm:$0xff]  ;;  %v168_v7 = vld [vmem:[%s235_s1] sm:$0xff] }
   0x4   :  { %v167_v8 = vld [vmem:[%s237_s0] sm:$0xff] }
   0x5   :  { %v181_v10 = vld [vmem:[%s236_s2] ss:$0 sm:$0xff] }
   0x6   :  { %95 = vmatpush.bf16.msra.mxu0 %v174_v1 }
   0xa   :  { %96 = vmatpush.bf16.msra.mxu0 %v173_v2 }
   0xe   :  { %97 = vmatpush.bf16.msra.mxu0 %v172_v3 }
  0x12   :  { %98 = vmatpush.bf16.msra.mxu0 %v171_v4 }
  0x16   :  { %99 = vmatpush.bf16.msra.mxu0 %v170_v5 }
  0x1a   :  { %100 = vmatpush.bf16.msra.mxu0 %v169_v6 }
  0x1e   :  { %101 = vmatpush.bf16.msra.mxu0 %v168_v7 }
  0x21   :  { %102 = vmatmul.bf16.vlgmr.msra.gmra.mxu0 %v167_v8 }
  0x9e   :  { %v103_v9 = vpop.f32.mrf.mxu0 }
  0x9f   :  { %v121_v12 = vadd.f32 %v181_v10, %v103_v9 }
  0xa6   :  { %v105_v11 = vpop.f32.mrf.mxu0 }
  0xa7   :  { %v122_v13 = vadd.f32 %v181_v10, %v105_v11 }
  0xa9   :  { %v179_v14 = vpack.c.bf16 %v122_v13, %v121_v12 }
  0xab   :  { %180 = vst [vmem:[%s238_s3] sm:$0xff] %v179_v14  }

// kernel: gcn_forward_padded.4
= control target key start
LH: loop header
LB: loop body
LE: loop exit
PB: predicated region body
PF: predicated region fallthrough
CT: control target
= control target key end

     0   :  { %8 = vsyncpa [#allocation4], 0  ;;  %s308_s0 = inlined_call_operand.hbm [shape: bf16[16,128], index: 0, kind: input, shape index: {}]   ;;  %s309_s1 = inlined_call_operand.hbm [shape: bf16[128,128], index: 1, kind: input, shape index: {}]   ;;  %s310_s2 = inlined_call_operand.vmem [shape: f32[1,128], index: 2, kind: input, shape index: {}]   ;;  %s311_s3 = inlined_call_operand.vmem [shape: bf16[16,128], index: 3, kind: output, shape index: {}]  }
   0x1   :  { %s14_s14 = sshll.u32 %s308_s0, 4  ;;  %s15_s14 = int_to_ptr.hbm [resolvable:$true] %s14_s14 }
   0x2   :  { %9 = vsyncpa [#allocation6], 0  ;;  %s272_s15 = smov [#allocation3]   ;;  %s27_s19 = sshll.u32 %s309_s1, 4  ;;  %s28_s19 = int_to_ptr.hbm [resolvable:$true] %s27_s19 }
   0x3   :  { %s16_s16 = sshll.u32 %s272_s15, 4  ;;  %s273_s20 = smov 64   ;;  %s17_s16 = int_to_ptr.vmem [resolvable:$true] %s16_s16 }
   0x4   :  { %s274_s21 = smov 4   ;;  %s275_s22 = smov [#allocation5]  }
   0x5   :  { %22 = dma.hbm_to_vmem [thread:$0]  %s15_s14, 128, %s17_s16, [#allocation4], %s273_s20, %s273_s20, %s274_s21  }
   0x6   :  { %s29_s23 = sshll.u32 %s275_s22, 4  ;;  %s30_s23 = int_to_ptr.vmem [resolvable:$true] %s29_s23 }
   0x7   :  { %35 = dma.hbm_to_vmem [thread:$0]  %s28_s19, 1024, %s30_s23, [#allocation6], %s273_s20, %s273_s20, %s274_s21  }
   0x8   :  { %268 = dma.done.wait [#allocation4], 128  }
   0x9   :  { %269 = vsyncadd [#allocation4], 4294967168 }
   0xa   :  { %270 = dma.done.wait [#allocation6], 1024  }
   0xb   :  { %271 = vsyncadd [#allocation6], 4294966272  ;;  %v209_v0 = vld [vmem:[#allocation5 + $0x38] sm:$0xff]  ;;  %v208_v1 = vld [vmem:[#allocation5 + $0x30] sm:$0xff] }
   0xc   :  { %126 = vmatpush.bf16.msra.mxu0 %v209_v0  ;;  %v207_v2 = vld [vmem:[#allocation5 + $0x28] sm:$0xff]  ;;  %v206_v3 = vld [vmem:[#allocation5 + $0x20] sm:$0xff]  ;;  %v205_v4 = vld [vmem:[#allocation5 + $0x18] sm:$0xff] }
   0xd   :  { %v204_v5 = vld [vmem:[#allocation5 + $0x10] sm:$0xff]  ;;  %v203_v6 = vld [vmem:[#allocation5 + $0x8] sm:$0xff]  ;;  %v202_v7 = vld [vmem:[#allocation5] sm:$0xff] }
   0xe   :  { %v201_v8 = vld [vmem:[#allocation3] sm:$0xff] }
   0xf   :  { %v219_v10 = vld [vmem:[%s310_s2] ss:$0 sm:$0xff] }
  0x10   :  { %127 = vmatpush.bf16.msra.mxu0 %v208_v1 }
  0x14   :  { %128 = vmatpush.bf16.msra.mxu0 %v207_v2 }
  0x18   :  { %129 = vmatpush.bf16.msra.mxu0 %v206_v3 }
  0x1c   :  { %130 = vmatpush.bf16.msra.mxu0 %v205_v4 }
  0x20   :  { %131 = vmatpush.bf16.msra.mxu0 %v204_v5 }
  0x24   :  { %132 = vmatpush.bf16.msra.mxu0 %v203_v6 }
  0x28   :  { %133 = vmatpush.bf16.msra.mxu0 %v202_v7 }
  0x2b   :  { %134 = vmatmul.bf16.vlgmr.msra.gmra.mxu0 %v201_v8 }
  0xa8   :  { %v135_v9 = vpop.f32.mrf.mxu0 }
  0xa9   :  { %v153_v12 = vadd.f32 %v219_v10, %v135_v9 }
  0xb0   :  { %v137_v11 = vpop.f32.mrf.mxu0 }
  0xb1   :  { %v154_v13 = vadd.f32 %v219_v10, %v137_v11 }
  0xb3   :  { %v213_v14 = vpack.c.bf16 %v154_v13, %v153_v12 }
  0xb5   :  { %214 = vst [vmem:[%s311_s3] sm:$0xff] %v213_v14  }
  0xb6   :  { %163 = vsyncpa [#allocation4], 1 }
  0xb7   :  { %164 = vsyncpa [#allocation6], 1 }

// kernel: gcn_forward_padded.5
= control target key start
LH: loop header
LB: loop body
LE: loop exit
PB: predicated region body
PF: predicated region fallthrough
CT: control target
= control target key end

     0   :  { %vm38_vm0 = vcmask 130048   ;;  %s130_s1 = inlined_call_operand.vmem [shape: bf16[16,128], index: 1, kind: input, shape index: {}]   ;;  %s131_s0 = inlined_call_operand.vmem [shape: bf16[16,16], index: 0, kind: input, shape index: {}]   ;;  %s132_s2 = inlined_call_operand.vmem [shape: f32[1,128], index: 2, kind: input, shape index: {}]   ;;  %s133_s3 = inlined_call_operand.vmem [shape: bf16[16,128], index: 3, kind: output, shape index: {}]  }
   0x1   :  { %v91_v0 = vld [vmem:[%s130_s1] sm:$0xff] }
   0x2   :  { %v90_v1 = vld [vmem:[%s131_s0] sm:$0xff]  ;;  %49 = vmatpush.bf16.msra.mxu0 %v91_v0 }
   0x3   :  { %v97_v3 = vld [vmem:[%s132_s2] ss:$0 sm:$0xff] }
   0x5   :  { %89 = vmatmul.msk.bf16.vlgmr.msra.gmra.mxu0 %vm38_vm0, %v90_v1 }
  0x82   :  { %v51_v2 = vpop.f32.mrf.mxu0 }
  0x83   :  { %v69_v4 = vadd.f32 %v97_v3, %v51_v2 }
  0x85   :  { %v71_v7 = vmax.f32 %v69_v4, 0.0 }
  0x8a   :  { %v53_v5 = vpop.f32.mrf.mxu0 }
  0x8b   :  { %v70_v6 = vadd.f32 %v97_v3, %v53_v5 }
  0x8d   :  { %v72_v8 = vmax.f32 %v70_v6, 0.0 }
  0x8f   :  { %v95_v9 = vpack.c.bf16 %v72_v8, %v71_v7 }
  0x91   :  { %96 = vst [vmem:[%s133_s3] sm:$0xff] %v95_v9  }

// kernel: gcn_forward_padded.7
= control target key start
LH: loop header
LB: loop body
LE: loop exit
PB: predicated region body
PF: predicated region fallthrough
CT: control target
= control target key end

     0   :  { %s168_s0 = inlined_call_operand.vmem [shape: bf16[16,16], index: 0, kind: input, shape index: {}]   ;;  %s169_s1 = inlined_call_operand.vmem [shape: bf16[16,128], index: 1, kind: input, shape index: {}]   ;;  %s170_s2 = inlined_call_operand.vmem [shape: f32[1,128], index: 2, kind: input, shape index: {}]   ;;  %s171_s3 = inlined_call_operand.hbm [shape: f32[16,128], index: 3, kind: output, shape index: {}]  }
   0x1   :  { %v102_v0 = vld [vmem:[%s169_s1] sm:$0xff] }
   0x2   :  { %v101_v1 = vld [vmem:[%s168_s0] sm:$0xff] }
   0x3   :  { %8 = vsyncpa [#allocation4], 0  ;;  %50 = vmatpush.bf16.msra.mxu0 %v102_v0  ;;  %vm39_vm0 = vcmask 130048   ;;  %v106_v2 = vld [vmem:[%s170_s2] ss:$0 sm:$0xff]  ;;  %s133_s18 = smov [#allocation3]  }
   0x4   :  { %s78_s19 = sshll.u32 %s133_s18, 4  ;;  %s80_s1 = sshll.u32 %s171_s3, 4  ;;  %s79_s19 = int_to_ptr.vmem [resolvable:$true] %s78_s19  ;;  %s81_s1 = int_to_ptr.hbm [resolvable:$true] %s80_s1 }
   0x5   :  { %s134_s0 = smov 128   ;;  %s135_s22 = smov 8  }
   0x6   :  { %100 = vmatmul.msk.bf16.vlgmr.msra.gmra.mxu0 %vm39_vm0, %v101_v1 }
  0x83   :  { %v52_v3 = vpop.f32.mrf.mxu0 }
  0x84   :  { %v70_v4 = vadd.f32 %v106_v2, %v52_v3 }
  0x86   :  { %72 = vst [vmem:[#allocation3] sm:$0xff] %v70_v4 }
  0x8b   :  { %v54_v5 = vpop.f32.mrf.mxu0 }
  0x8c   :  { %v71_v6 = vadd.f32 %v106_v2, %v54_v5 }
  0x8e   :  { %73 = vst [vmem:[#allocation3 + $0x8] sm:$0xff] %v71_v6 }
  0x8f   :  { %86 = dma.vmem_to_hbm [thread:$0]  %s79_s19, 256, %s81_s1, [#allocation4], %s134_s0, %s134_s0, %s135_s22  }
  0x90   :  { %131 = dma.done.wait [#allocation4], 256  }
  0x91   :  { %132 = vsyncadd [#allocation4], 4294967040 }
  0x92   :  { %91 = vsyncpa [#allocation4], 1 }

</bundles_post_ra>
